<compile_context>
chip_gen: v7x
topology: tpu7x:2x2x1
jax: 0.10.0
libtpu: 0.0.40
codegen_flags: <defaults>
</compile_context>

<pallas_src>
import functools

import jax
import jax.numpy as jnp
from jax import lax
from jax.experimental import pallas as pl
from jax.experimental.pallas import tpu as pltpu

# ---------------- model hyper-parameters (from v2.py) ----------------
N_EMBD = 192
N_HEAD = 3
HEAD_SIZE = N_EMBD // N_HEAD            # 64
N_LAYER = 3
BLOCK_SIZE = 128
DROPOUT_P = 0.2
VOCAB_SIZE = 65                         # len(chars); `text` is not provided

# ---------------- TPU-friendly padded sizes ----------------
SUBLANES = 8
C_PAD = 256                             # n_embd (192) padded to a 128-lane multiple
H_FF = 4 * N_EMBD                       # 768, already lane aligned
V_PAD = 128                             # vocab (65) padded to a 128-lane multiple
LN_EPS = 1e-5


def _round_up(x, m):
    return (x + m - 1) // m * m


def _row_tiles(m, preferred=256):
    """Pick a row tile (multiple of 8) and the padded row count."""
    if m >= preferred:
        tile = preferred
    else:
        tile = _round_up(max(m, SUBLANES), SUBLANES)
    return tile, _round_up(m, tile)


def _mxdot(a, b):
    """bf16 MXU inputs, f32 accumulation."""
    return jnp.dot(a.astype(jnp.bfloat16), b.astype(jnp.bfloat16),
                   preferred_element_type=jnp.float32)


# ======================= FeedForward (Linear-ReLU-Linear-Dropout) =======================
def _ffn_kernel(*refs, apply_dropout):
    if apply_dropout:
        x_ref, w1_ref, b1_ref, w2_ref, b2_ref, m_ref, o_ref = refs
    else:
        x_ref, w1_ref, b1_ref, w2_ref, b2_ref, o_ref = refs
        m_ref = None
    h = _mxdot(x_ref[...], w1_ref[...]) + b1_ref[...]
    h = jnp.maximum(h, 0.0)
    y = _mxdot(h, w2_ref[...]) + b2_ref[...]
    if m_ref is not None:
        y = y * m_ref[...]                      # keep-mask, already 1/(1-p) scaled
    o_ref[...] = y.astype(o_ref.dtype)


def feedforward(x, w1, b1, w2, b2, drop_mask=None, *, tile_m=256):
    """x: [M, C_PAD] f32, w1: [C_PAD, H_FF] bf16, b1: [1, H_FF] f32,
       w2: [H_FF, C_PAD] bf16, b2: [1, C_PAD] f32,
       drop_mask: None (eval) or [M, C_PAD] f32 of {0, 1/(1-p)}.  -> [M, C_PAD] f32."""
    m, cp = x.shape
    hf = w1.shape[1]
    tm, m_pad = _row_tiles(m, tile_m)
    if m_pad != m:
        x = jnp.pad(x, ((0, m_pad - m), (0, 0)))
        if drop_mask is not None:
            drop_mask = jnp.pad(drop_mask, ((0, m_pad - m), (0, 0)))

    row_spec = pl.BlockSpec((tm, cp), lambda i: (i, 0))
    in_specs = [
        row_spec,
        pl.BlockSpec((cp, hf), lambda i: (0, 0)),
        pl.BlockSpec((1, hf), lambda i: (0, 0)),
        pl.BlockSpec((hf, cp), lambda i: (0, 0)),
        pl.BlockSpec((1, cp), lambda i: (0, 0)),
    ]
    args = [x, w1, b1, w2, b2]
    if drop_mask is not None:
        in_specs.append(row_spec)
        args.append(drop_mask)

    bytes_accessed = sum(int(a.size) * a.dtype.itemsize for a in args) + m_pad * cp * 4
    out = pl.pallas_call(
        functools.partial(_ffn_kernel, apply_dropout=drop_mask is not None),
        out_shape=jax.ShapeDtypeStruct((m_pad, cp), jnp.float32),
        grid=(m_pad // tm,),
        in_specs=in_specs,
        out_specs=row_spec,
        compiler_params=pltpu.CompilerParams(dimension_semantics=("parallel",)),
        cost_estimate=pl.CostEstimate(flops=4 * m_pad * cp * hf, transcendentals=0,
                                      bytes_accessed=int(bytes_accessed)),
    )(*args)
    return out[:m]


# ======================= LayerNorm =======================
def _layernorm_kernel(x_ref, g_ref, b_ref, o_ref, *, n_valid):
    x = x_ref[...]
    cp = x.shape[-1]
    valid = (lax.broadcasted_iota(jnp.int32, (1, cp), 1) < n_valid).astype(jnp.float32)
    mean = jnp.sum(x, axis=-1, keepdims=True) / n_valid    # pad lanes are zero
    diff = (x - mean) * valid                              # mask pad lanes for the var
    var = jnp.sum(diff * diff, axis=-1, keepdims=True) / n_valid
    y = diff * lax.rsqrt(var + LN_EPS) * g_ref[...] + b_ref[...]
    o_ref[...] = y.astype(o_ref.dtype)


def layernorm(x, gamma, beta, *, n_valid=N_EMBD, tile_m=256):
    m, cp = x.shape
    tm, m_pad = _row_tiles(m, tile_m)
    if m_pad != m:
        x = jnp.pad(x, ((0, m_pad - m), (0, 0)))
    row_spec = pl.BlockSpec((tm, cp), lambda i: (i, 0))
    vec_spec = pl.BlockSpec((1, cp), lambda i: (0, 0))
    out = pl.pallas_call(
        functools.partial(_layernorm_kernel, n_valid=n_valid),
        out_shape=jax.ShapeDtypeStruct((m_pad, cp), jnp.float32),
        grid=(m_pad // tm,),
        in_specs=[row_spec, vec_spec, vec_spec],
        out_specs=row_spec,
        compiler_params=pltpu.CompilerParams(dimension_semantics=("parallel",)),
    )(x, gamma, beta)
    return out[:m]


# ======================= lm_head linear =======================
def _linear_kernel(x_ref, w_ref, b_ref, o_ref):
    o_ref[...] = (_mxdot(x_ref[...], w_ref[...]) + b_ref[...]).astype(o_ref.dtype)


def linear(x, w, b, *, tile_m=256):
    m, cp = x.shape
    n = w.shape[1]
    tm, m_pad = _row_tiles(m, tile_m)
    if m_pad != m:
        x = jnp.pad(x, ((0, m_pad - m), (0, 0)))
    out = pl.pallas_call(
        _linear_kernel,
        out_shape=jax.ShapeDtypeStruct((m_pad, n), jnp.float32),
        grid=(m_pad // tm,),
        in_specs=[pl.BlockSpec((tm, cp), lambda i: (i, 0)),
                  pl.BlockSpec((cp, n), lambda i: (0, 0)),
                  pl.BlockSpec((1, n), lambda i: (0, 0))],
        out_specs=pl.BlockSpec((tm, n), lambda i: (i, 0)),
        compiler_params=pltpu.CompilerParams(dimension_semantics=("parallel",)),
        cost_estimate=pl.CostEstimate(
            flops=2 * m_pad * cp * n, transcendentals=0,
            bytes_accessed=int(x.size) * 4 + int(w.size) * 2 + int(b.size) * 4
                           + m_pad * n * 4),
    )(x, w, b)
    return out[:m]


# ======================= Multi-head causal self-attention =======================
def _attn_kernel(x_ref, wq_ref, wk_ref, wv_ref, wo_ref, bo_ref, o_ref, *,
                 n_head, scale):
    x = x_ref[0]                                    # [T, C_PAD] f32
    t = x.shape[0]
    xb = x.astype(jnp.bfloat16)
    row = lax.broadcasted_iota(jnp.int32, (t, t), 0)
    col = lax.broadcasted_iota(jnp.int32, (t, t), 1)
    causal = row >= col
    acc = None
    for h in range(n_head):                         # static 3-head loop
        q = jnp.dot(xb, wq_ref[h], preferred_element_type=jnp.float32)   # [T, hs]
        k = jnp.dot(xb, wk_ref[h], preferred_element_type=jnp.float32)
        v = jnp.dot(xb, wv_ref[h], preferred_element_type=jnp.float32)
        # wei = q @ k^T * C**-0.5  (PyTorch Head uses full n_embd for the scale)
        s = lax.dot_general(q.astype(jnp.bfloat16), k.astype(jnp.bfloat16),
                            (((1,), (1,)), ((), ())),
                            preferred_element_type=jnp.float32) * scale  # [T, T]
        s = jnp.where(causal, s, -1e30)
        s = s - jnp.max(s, axis=-1, keepdims=True)
        p = jnp.exp(s)
        p = p / jnp.sum(p, axis=-1, keepdims=True)
        # TODO(synk): training-mode dropout on the attention weights / proj output
        # would take externally generated keep-masks here (eval mode == identity).
        o_h = jnp.dot(p.astype(jnp.bfloat16), v.astype(jnp.bfloat16),
                      preferred_element_type=jnp.float32)                # [T, hs]
        contrib = jnp.dot(o_h.astype(jnp.bfloat16), wo_ref[h],
                          preferred_element_type=jnp.float32)            # [T, C_PAD]
        acc = contrib if acc is None else acc + contrib
    o_ref[0] = (acc + bo_ref[...]).astype(o_ref.dtype)


def attention(x, wq, wk, wv, wo, bo):
    """x: [B, T, C_PAD] f32, wq/wk/wv: [H, C_PAD, hs] bf16, wo: [H, hs, C_PAD] bf16,
       bo: [1, C_PAD] f32.  -> [B, T, C_PAD] f32."""
    b, t, cp = x.shape
    n_head, _, hs = wq.shape
    kernel = functools.partial(_attn_kernel, n_head=n_head, scale=N_EMBD ** -0.5)
    w_spec = lambda shape: pl.BlockSpec(shape, lambda i: (0, 0, 0))
    return pl.pallas_call(
        kernel,
        out_shape=jax.ShapeDtypeStruct((b, t, cp), jnp.float32),
        grid=(b,),
        in_specs=[pl.BlockSpec((1, t, cp), lambda i: (i, 0, 0)),
                  w_spec((n_head, cp, hs)),
                  w_spec((n_head, cp, hs)),
                  w_spec((n_head, cp, hs)),
                  w_spec((n_head, hs, cp)),
                  pl.BlockSpec((1, cp), lambda i: (0, 0))],
        out_specs=pl.BlockSpec((1, t, cp), lambda i: (i, 0, 0)),
        compiler_params=pltpu.CompilerParams(dimension_semantics=("parallel",)),
    )(x, wq, wk, wv, wo, bo)


# ======================= parameters =======================
def init_params(key):
    """PyTorch-default init, stored pre-transposed ([in, out]), bf16 weights,
    zero-padded to the lane-dense layout (192 -> 256 features, vocab 65 -> 128)."""
    keys = iter(jax.random.split(key, 64))

    def uniform(shape, fan_in):
        bound = fan_in ** -0.5
        return jax.random.uniform(next(keys), shape, jnp.float32, -bound, bound)

    def pad2(a, rows, cols):
        return jnp.pad(a, ((0, rows - a.shape[0]), (0, cols - a.shape[1])))

    params = {
        "tok_emb": pad2(jax.random.normal(next(keys), (VOCAB_SIZE, N_EMBD)),
                        VOCAB_SIZE, C_PAD),
        "pos_emb": pad2(jax.random.normal(next(keys), (BLOCK_SIZE, N_EMBD)),
                        BLOCK_SIZE, C_PAD),
        "blocks": [],
        "lnf_g": pad2(jnp.ones((1, N_EMBD), jnp.float32), 1, C_PAD),
        "lnf_b": jnp.zeros((1, C_PAD), jnp.float32),
        "w_head": pad2(uniform((N_EMBD, VOCAB_SIZE), N_EMBD),
                       C_PAD, V_PAD).astype(jnp.bfloat16),
        "b_head": pad2(uniform((VOCAB_SIZE,), N_EMBD)[None, :], 1, V_PAD),
    }
    for _ in range(N_LAYER):
        wqs, wks, wvs = [], [], []
        for _ in range(N_HEAD):
            wqs.append(pad2(uniform((N_EMBD, HEAD_SIZE), N_EMBD), C_PAD, HEAD_SIZE))
            wks.append(pad2(uniform((N_EMBD, HEAD_SIZE), N_EMBD), C_PAD, HEAD_SIZE))
            wvs.append(pad2(uniform((N_EMBD, HEAD_SIZE), N_EMBD), C_PAD, HEAD_SIZE))
        wo_full = uniform((N_EMBD, N_EMBD), N_EMBD)      # proj weight [in, out]
        bo = uniform((N_EMBD,), N_EMBD)
        blk = {
            "ln1_g": pad2(jnp.ones((1, N_EMBD), jnp.float32), 1, C_PAD),
            "ln1_b": jnp.zeros((1, C_PAD), jnp.float32),
            "wq": jnp.stack(wqs).astype(jnp.bfloat16),
            "wk": jnp.stack(wks).astype(jnp.bfloat16),
            "wv": jnp.stack(wvs).astype(jnp.bfloat16),
            "wo": jnp.stack([pad2(wo_full[h * HEAD_SIZE:(h + 1) * HEAD_SIZE],
                                  HEAD_SIZE, C_PAD) for h in range(N_HEAD)]
                            ).astype(jnp.bfloat16),
            "bo": pad2(bo[None, :], 1, C_PAD),
            "ln2_g": pad2(jnp.ones((1, N_EMBD), jnp.float32), 1, C_PAD),
            "ln2_b": jnp.zeros((1, C_PAD), jnp.float32),
            "w1": pad2(uniform((N_EMBD, H_FF), N_EMBD), C_PAD, H_FF).astype(jnp.bfloat16),
            "b1": uniform((H_FF,), N_EMBD)[None, :],
            "w2": pad2(uniform((H_FF, N_EMBD), H_FF), H_FF, C_PAD).astype(jnp.bfloat16),
            "b2": pad2(uniform((N_EMBD,), H_FF)[None, :], 1, C_PAD),
        }
        params["blocks"].append(blk)
    return params


# ======================= full model forward =======================
def bigram_lm_forward(params, idx, targets=None, *, dropout_rng=None):
    """BigramLanguageModel.forward(idx, targets).  dropout_rng=None -> eval mode."""
    b, t = idx.shape
    cp = params["tok_emb"].shape[1]
    m = b * t
    # token/position embedding gathers stay in plain JAX (gather, not a kernel).
    x = jnp.take(params["tok_emb"], idx, axis=0) + params["pos_emb"][:t][None]
    rng = dropout_rng
    for blk in params["blocks"]:
        h = layernorm(x.reshape(m, cp), blk["ln1_g"], blk["ln1_b"]).reshape(b, t, cp)
        x = x + attention(h, blk["wq"], blk["wk"], blk["wv"], blk["wo"], blk["bo"])
        h = layernorm(x.reshape(m, cp), blk["ln2_g"], blk["ln2_b"])
        mask = None
        if rng is not None:
            rng, sub = jax.random.split(rng)
            keep = jax.random.bernoulli(sub, 1.0 - DROPOUT_P, (m, N_EMBD))
            mask = jnp.pad(keep.astype(jnp.float32) / (1.0 - DROPOUT_P),
                           ((0, 0), (0, cp - N_EMBD)))
        f = feedforward(h, blk["w1"], blk["b1"], blk["w2"], blk["b2"], mask)
        x = x + f.reshape(b, t, cp)
    xf = layernorm(x.reshape(m, cp), params["lnf_g"], params["lnf_b"])
    logits = linear(xf, params["w_head"], params["b_head"])[:, :VOCAB_SIZE]
    logits = logits.reshape(b, t, VOCAB_SIZE)
    loss = None
    if targets is not None:
        # F.cross_entropy equivalent, left in plain JAX (log-softmax + gather).
        lsm = jax.nn.log_softmax(logits.reshape(m, VOCAB_SIZE), axis=-1)
        loss = -jnp.mean(jnp.take_along_axis(lsm, targets.reshape(m, 1), axis=1))
    # TODO(synk): generate() (autoregressive multinomial sampling) is host-side
    # control flow and is not implemented as a kernel.
    return logits, loss


# ======================= pure-JAX reference (same bf16/f32 policy) =======================
def _ref_layernorm(x, g, b, n_valid=N_EMBD):
    cp = x.shape[-1]
    valid = (jnp.arange(cp) < n_valid).astype(jnp.float32)
    mean = jnp.sum(x, axis=-1, keepdims=True) / n_valid
    diff = (x - mean) * valid
    var = jnp.sum(diff * diff, axis=-1, keepdims=True) / n_valid
    return diff * lax.rsqrt(var + LN_EPS) * g + b


def _ref_ffn(x, w1, b1, w2, b2, mask=None):
    h = jnp.maximum(_mxdot(x, w1) + b1, 0.0)
    y = _mxdot(h, w2) + b2
    return y if mask is None else y * mask


def _ref_attention(x, wq, wk, wv, wo, bo):
    n_head = wq.shape[0]
    t = x.shape[1]
    causal = jnp.tril(jnp.ones((t, t), dtype=bool))
    scale = N_EMBD ** -0.5
    xb = x.astype(jnp.bfloat16)
    acc = jnp.zeros(x.shape, jnp.float32)
    for h in range(n_head):
        q = jnp.dot(xb, wq[h], preferred_element_type=jnp.float32)
        k = jnp.dot(xb, wk[h], preferred_element_type=jnp.float32)
        v = jnp.dot(xb, wv[h], preferred_element_type=jnp.float32)
        s = jnp.einsum("btd,bsd->bts", q.astype(jnp.bfloat16), k.astype(jnp.bfloat16),
                       preferred_element_type=jnp.float32) * scale
        s = jnp.where(causal, s, -1e30)
        s = s - jnp.max(s, axis=-1, keepdims=True)
        p = jnp.exp(s)
        p = p / jnp.sum(p, axis=-1, keepdims=True)
        o = jnp.einsum("bts,bsd->btd", p.astype(jnp.bfloat16), v.astype(jnp.bfloat16),
                       preferred_element_type=jnp.float32)
        acc = acc + jnp.dot(o.astype(jnp.bfloat16), wo[h],
                            preferred_element_type=jnp.float32)
    return acc + bo


def ref_forward(params, idx):
    t = idx.shape[1]
    x = jnp.take(params["tok_emb"], idx, axis=0) + params["pos_emb"][:t][None]
    for blk in params["blocks"]:
        h = _ref_layernorm(x, blk["ln1_g"], blk["ln1_b"])
        x = x + _ref_attention(h, blk["wq"], blk["wk"], blk["wv"], blk["wo"], blk["bo"])
        h = _ref_layernorm(x, blk["ln2_g"], blk["ln2_b"])
        x = x + _ref_ffn(h, blk["w1"], blk["b1"], blk["w2"], blk["b2"])
    x = _ref_layernorm(x, params["lnf_g"], params["lnf_b"])
    logits = _mxdot(x, params["w_head"]) + params["b_head"]
    return logits[..., :VOCAB_SIZE]


# ======================= smoke test =======================
if __name__ == "__main__":
    root = jax.random.PRNGKey(0)
    k_param, k_idx, k_ffn, k_drop, k_tgt, k_rng = jax.random.split(root, 6)

    B, T = 2, 8
    params = init_params(k_param)
    idx = jax.random.randint(k_idx, (B, T), 0, VOCAB_SIZE, dtype=jnp.int32)
    targets = jax.random.randint(k_tgt, (B, T), 0, VOCAB_SIZE, dtype=jnp.int32)

    # 1) FeedForward sub-module (eval mode) vs JAX reference.
    blk0 = params["blocks"][0]
    h0 = jax.random.normal(k_ffn, (B * T, N_EMBD), jnp.float32)
    h0p = jnp.pad(h0, ((0, 0), (0, C_PAD - N_EMBD)))
    y_pl = jax.block_until_ready(
        feedforward(h0p, blk0["w1"], blk0["b1"], blk0["w2"], blk0["b2"]))[:, :N_EMBD]
    y_ref = _ref_ffn(h0p, blk0["w1"], blk0["b1"], blk0["w2"], blk0["b2"])[:, :N_EMBD]
    assert bool(jnp.allclose(y_pl, y_ref, atol=1e-2, rtol=1e-2)), "FFN mismatch"

    # 2) FeedForward in training mode (external keep-mask, 1/(1-p) scaling).
    keep = jax.random.bernoulli(k_drop, 1.0 - DROPOUT_P, (B * T, N_EMBD))
    mask = jnp.pad(keep.astype(jnp.float32) / (1.0 - DROPOUT_P),
                   ((0, 0), (0, C_PAD - N_EMBD)))
    y_tr = jax.block_until_ready(
        feedforward(h0p, blk0["w1"], blk0["b1"], blk0["w2"], blk0["b2"], mask))
    assert y_tr.shape == (B * T, C_PAD) and bool(jnp.all(jnp.isfinite(y_tr)))

    # 3) Full BigramLanguageModel forward (eval) vs JAX reference + loss.
    logits, loss = bigram_lm_forward(params, idx, targets)
    logits = jax.block_until_ready(logits)
    ref_logits = ref_forward(params, idx)
    assert logits.shape == (B, T, VOCAB_SIZE)
    assert bool(jnp.allclose(logits, ref_logits, atol=5e-2, rtol=5e-2)), "logits mismatch"
    assert loss is not None and bool(jnp.isfinite(loss))

    # 4) Full forward with FFN dropout active (training mode).
    logits_tr, _ = bigram_lm_forward(params, idx, dropout_rng=k_rng)
    logits_tr = jax.block_until_ready(logits_tr)
    assert bool(jnp.all(jnp.isfinite(logits_tr)))

    print("KERNEL_OK")
</pallas_src>

<mosaic_0001>
module attributes {stable_mosaic.version = 11 : i64} {
  func.func @_ffn_kernel(%arg0: i32, %arg1: memref<16x256xf32, #tpu.memory_space<vmem>>, %arg2: memref<256x768xbf16, #tpu.memory_space<vmem>>, %arg3: memref<1x768xf32, #tpu.memory_space<vmem>>, %arg4: memref<768x256xbf16, #tpu.memory_space<vmem>>, %arg5: memref<1x256xf32, #tpu.memory_space<vmem>>, %arg6: memref<16x256xf32, #tpu.memory_space<vmem>>) attributes {dimension_semantics = [#tpu.dimension_semantics<parallel>], iteration_bounds = array<i64: 1>, scalar_prefetch = 0 : i64, scratch_operands = 0 : i64, tpu.core_type = #tpu.core_type<tc>, window_params = [{transform_indices = @transform_0, window_bounds = array<i64: 16, 256>}, {pipeline_mode = #tpu.pipeline_mode<synchronous>, transform_indices = @transform_1, window_bounds = array<i64: 256, 768>}, {pipeline_mode = #tpu.pipeline_mode<synchronous>, transform_indices = @transform_2, window_bounds = array<i64: 1, 768>}, {pipeline_mode = #tpu.pipeline_mode<synchronous>, transform_indices = @transform_3, window_bounds = array<i64: 768, 256>}, {pipeline_mode = #tpu.pipeline_mode<synchronous>, transform_indices = @transform_4, window_bounds = array<i64: 1, 256>}, {transform_indices = @transform_5, window_bounds = array<i64: 16, 256>}]} {
    %c0 = arith.constant 0 : index
    %c0_0 = arith.constant 0 : index
    %0 = vector.load %arg1[%c0, %c0_0] : memref<16x256xf32, #tpu.memory_space<vmem>>, vector<16x256xf32>
    %c0_1 = arith.constant 0 : index
    %c0_2 = arith.constant 0 : index
    %1 = vector.load %arg2[%c0_1, %c0_2] : memref<256x768xbf16, #tpu.memory_space<vmem>>, vector<256x768xbf16>
    %2 = arith.truncf %0 : vector<16x256xf32> to vector<16x256xbf16>
    %cst = arith.constant dense<0.000000e+00> : vector<16x768xf32>
    %3 = tpu.matmul %2, %1, %cst {dimension_numbers = #tpu.dot_dimension_numbers<[1], [0], [0], [1], [0, 0, 1, 1], [], []>} : vector<16x256xbf16>, vector<256x768xbf16>, vector<16x768xf32> -> vector<16x768xf32>
    %c0_3 = arith.constant 0 : index
    %c0_4 = arith.constant 0 : index
    %4 = vector.load %arg3[%c0_3, %c0_4] : memref<1x768xf32, #tpu.memory_space<vmem>>, vector<1x768xf32>
    %5 = vector.broadcast %4 : vector<1x768xf32> to vector<16x768xf32>
    %6 = arith.addf %3, %5 : vector<16x768xf32>
    %cst_5 = arith.constant 0.000000e+00 : f32
    %7 = vector.broadcast %cst_5 : f32 to vector<16x768xf32>
    %8 = arith.maximumf %6, %7 : vector<16x768xf32>
    %c0_6 = arith.constant 0 : index
    %c0_7 = arith.constant 0 : index
    %9 = vector.load %arg4[%c0_6, %c0_7] : memref<768x256xbf16, #tpu.memory_space<vmem>>, vector<768x256xbf16>
    %10 = arith.truncf %8 : vector<16x768xf32> to vector<16x768xbf16>
    %cst_8 = arith.constant dense<0.000000e+00> : vector<16x256xf32>
    %11 = tpu.matmul %10, %9, %cst_8 {dimension_numbers = #tpu.dot_dimension_numbers<[1], [0], [0], [1], [0, 0, 1, 1], [], []>} : vector<16x768xbf16>, vector<768x256xbf16>, vector<16x256xf32> -> vector<16x256xf32>
    %c0_9 = arith.constant 0 : index
    %c0_10 = arith.constant 0 : index
    %12 = vector.load %arg5[%c0_9, %c0_10] : memref<1x256xf32, #tpu.memory_space<vmem>>, vector<1x256xf32>
    %13 = vector.broadcast %12 : vector<1x256xf32> to vector<16x256xf32>
    %14 = arith.addf %11, %13 : vector<16x256xf32>
    %c0_11 = arith.constant 0 : index
    %c0_12 = arith.constant 0 : index
    %15 = vector.load %arg6[%c0_11, %c0_12] : memref<16x256xf32, #tpu.memory_space<vmem>>, vector<16x256xf32>
    tpu.vector_store %arg6[%c0_11, %c0_12], %14 {strides = array<i32>} : memref<16x256xf32, #tpu.memory_space<vmem>>, vector<16x256xf32>,
    return
  }
  func.func @transform_0(%arg0: i32) -> (i32, i32) {
    %c0_i32 = arith.constant 0 : i32
    %c0_i32_0 = arith.constant 0 : i32
    return %arg0, %c0_i32 : i32, i32
  }
  func.func @transform_1(%arg0: i32) -> (i32, i32) {
    %c0_i32 = arith.constant 0 : i32
    %c0_i32_0 = arith.constant 0 : i32
    %c0_i32_1 = arith.constant 0 : i32
    return %c0_i32, %c0_i32_0 : i32, i32
  }
  func.func @transform_2(%arg0: i32) -> (i32, i32) {
    %c0_i32 = arith.constant 0 : i32
    %c0_i32_0 = arith.constant 0 : i32
    %c0_i32_1 = arith.constant 0 : i32
    return %c0_i32, %c0_i32_0 : i32, i32
  }
  func.func @transform_3(%arg0: i32) -> (i32, i32) {
    %c0_i32 = arith.constant 0 : i32
    %c0_i32_0 = arith.constant 0 : i32
    %c0_i32_1 = arith.constant 0 : i32
    return %c0_i32, %c0_i32_0 : i32, i32
  }
  func.func @transform_4(%arg0: i32) -> (i32, i32) {
    %c0_i32 = arith.constant 0 : i32
    %c0_i32_0 = arith.constant 0 : i32
    %c0_i32_1 = arith.constant 0 : i32
    return %c0_i32, %c0_i32_0 : i32, i32
  }
  func.func @transform_5(%arg0: i32) -> (i32, i32) {
    %c0_i32 = arith.constant 0 : i32
    %c0_i32_0 = arith.constant 0 : i32
    return %arg0, %c0_i32 : i32, i32
  }
}

</mosaic_0001>

<bundles_post_ra>
// kernel: tpu_custom_call.1
= control target key start
LH: loop header
LB: loop body
LE: loop exit
PB: predicated region body
PF: predicated region fallthrough
CT: control target
= control target key end

     0   :  { %10 = vsyncpa [#allocation3], 0  ;;  %s2292_s0 = inlined_call_operand.hbm [shape: f32[16,256], index: 0, kind: input, shape index: {}]   ;;  %s2293_s1 = inlined_call_operand.hbm [shape: bf16[256,768], index: 1, kind: input, shape index: {}]   ;;  %s2294_s2 = inlined_call_operand.vmem [shape: f32[1,768], index: 2, kind: input, shape index: {}]   ;;  %s2295_s3 = inlined_call_operand.hbm [shape: bf16[768,256], index: 3, kind: input, shape index: {}]   ;;  %s2296_s4 = inlined_call_operand.vmem [shape: f32[1,256], index: 4, kind: input, shape index: {}]   ;;  %s2297_s5 = inlined_call_operand.hbm [shape: f32[16,256], index: 5, kind: output, shape index: {}]  }
   0x1   :  { %11 = vsyncpa [#allocation6], 0 }
   0x2   :  { %12 = vsyncpa [#allocation4], 0  ;;  %s2158_s18 = smov [#allocation5]   ;;  %s2064_s22 = scalar_lea.hbm %s2293_s1, 12288 }
   0x3   :  { %s30_s19 = sshll.u32 %s2158_s18, 4  ;;  %p2065_p0 = scmp.ne.s32.totalorder %s2293_s1, %s2064_s22  ;;  %s31_s19 = int_to_ptr.vmem [resolvable:$true] %s30_s19 }
   0x4   :  { %p2068_p1 = scmp.lt.u32.totalorder %s2064_s22, %s2293_s1 }
   0x6   :  { %p2070_p2 = pnand %p2068_p1, %p2065_p0 }
   0x8   :  { %2073 = shalt.err (!%p2070_p2)
}
   0x9   :  { %s2074_s27 = scalar_lea.vmem %s31_s19, 12288  ;;  %p2079_p4 = scmp.lt.s32.totalorder %s31_s19, %s31_s19 }
   0xa   :  { %p2075_p3 = scmp.ne.s32.totalorder %s31_s19, %s2074_s27  ;;  %p2080_p5 = scmp.lt.s32.totalorder %s2074_s27, %s2074_s27 }
   0xc   :  { %p2081_p6 = por %p2080_p5, %p2079_p4 }
   0xe   :  { %p2082_p7 = pnand %p2081_p6, %p2075_p3 }
  0x10   :  { %2085 = shalt.err (!%p2082_p7)
}
  0x11   :  { %s2159_s28 = smov 384   ;;  %s2160_s29 = smov 24  }
  0x12   :  { %36 = dma.hbm_to_vmem [thread:$0]  %s2293_s1, 12288, %s31_s19, [#allocation6], %s2159_s28, %s2159_s28, %s2160_s29  }
  0x13   :  { %s2161_s7 = smov [#allocation2]   ;;  %s2086_s11 = scalar_lea.hbm %s2292_s0, 512 }
  0x14   :  { %s18_s8 = sshll.u32 %s2161_s7, 4  ;;  %p2087_p8 = scmp.ne.s32.totalorder %s2292_s0, %s2086_s11  ;;  %s19_s8 = int_to_ptr.vmem [resolvable:$true] %s18_s8 }
  0x15   :  { %p2090_p9 = scmp.lt.u32.totalorder %s2086_s11, %s2292_s0 }
  0x17   :  { %p2092_p10 = pnand %p2090_p9, %p2087_p8 }
  0x19   :  { %2095 = shalt.err (!%p2092_p10)
}
  0x1a   :  { %s2096_s16 = scalar_lea.vmem %s19_s8, 512  ;;  %p2101_p12 = scmp.lt.s32.totalorder %s19_s8, %s19_s8 }
  0x1b   :  { %p2097_p11 = scmp.ne.s32.totalorder %s19_s8, %s2096_s16  ;;  %p2102_p13 = scmp.lt.s32.totalorder %s2096_s16, %s2096_s16 }
  0x1d   :  { %p2103_p0 = por %p2102_p13, %p2101_p12 }
  0x1f   :  { %p2104_p1 = pnand %p2103_p0, %p2097_p11 }
  0x21   :  { %2107 = shalt.err (!%p2104_p1)
}
  0x22   :  { %s2162_s1 = smov 256   ;;  %s2163_s17 = smov 16  }
  0x23   :  { %24 = dma.hbm_to_vmem [thread:$0]  %s2292_s0, 512, %s19_s8, [#allocation3], %s2162_s1, %s2162_s1, %s2163_s17  }
  0x24   :  { %s2164_s20 = smov [#allocation7]   ;;  %s2108_s24 = scalar_lea.hbm %s2295_s3, 12288 }
  0x25   :  { %s44_s21 = sshll.u32 %s2164_s20, 4  ;;  %p2109_p2 = scmp.ne.s32.totalorder %s2295_s3, %s2108_s24  ;;  %s45_s21 = int_to_ptr.vmem [resolvable:$true] %s44_s21 }
  0x26   :  { %p2112_p3 = scmp.lt.u32.totalorder %s2108_s24, %s2295_s3 }
  0x28   :  { %p2114_p4 = pnand %p2112_p3, %p2109_p2 }
  0x2a   :  { %2117 = shalt.err (!%p2114_p4)
}
  0x2b   :  { %s2118_s29 = scalar_lea.vmem %s45_s21, 12288  ;;  %p2123_p6 = scmp.lt.s32.totalorder %s45_s21, %s45_s21 }
  0x2c   :  { %p2119_p5 = scmp.ne.s32.totalorder %s45_s21, %s2118_s29  ;;  %p2124_p7 = scmp.lt.s32.totalorder %s2118_s29, %s2118_s29 }
  0x2e   :  { %p2125_p8 = por %p2124_p7, %p2123_p6 }
  0x30   :  { %p2126_p9 = pnand %p2125_p8, %p2119_p5 }
  0x32   :  { %2129 = shalt.err (!%p2126_p9)
}
  0x33   :  { %s2165_s0 = smov 128   ;;  %s2166_s30 = smov 8  }
  0x34   :  { %50 = dma.hbm_to_vmem [thread:$0]  %s2295_s3, 12288, %s45_s21, [#allocation6], %s2165_s0, %s2165_s0, %s2166_s30  }
  0x35   :  { %2152 = dma.done.wait [#allocation3], 512  }
  0x36   :  { %2153 = vsyncadd [#allocation3], 4294966784 }
  0x37   :  { %2154 = dma.done.wait [#allocation6], 24576  }
  0x38   :  { %2155 = vsyncadd [#allocation6], 4294942720  ;;  %v1776_v0 = vld [vmem:[#allocation5 + $0x4] ss:$24 sps:$4 sm:$0xff]   ;;  %v1778_v1 = vld [vmem:[#allocation5] ss:$24 sps:$4 sm:$0xff]  }
  0x39   :  { %676 = vmatprep.subr.bf16.mxu0 %v1776_v0  ;;  %v1779_v2 = vld [vmem:[#allocation5 + $0x34] ss:$24 sps:$4 sm:$0xff]   ;;  %v1781_v3 = vld [vmem:[#allocation5 + $0x30] ss:$24 sps:$4 sm:$0xff]   ;;  %v1782_v4 = vld [vmem:[#allocation5 + $0x64] ss:$24 sps:$4 sm:$0xff]  }
  0x3a   :  { %677 = vmatpush1.bf16.msra.mxu0 %v1778_v1  ;;  %v1784_v5 = vld [vmem:[#allocation5 + $0x60] ss:$24 sps:$4 sm:$0xff]   ;;  %v1785_v6 = vld [vmem:[#allocation5 + $0x94] ss:$24 sps:$4 sm:$0xff]   ;;  %v1787_v7 = vld [vmem:[#allocation5 + $0x90] ss:$24 sps:$4 sm:$0xff]  }
  0x3b   :  { %678 = vmatprep.subr.bf16.mxu0 %v1779_v2  ;;  %v1788_v8 = vld [vmem:[#allocation5 + $0xc4] ss:$24 sps:$4 sm:$0xff]   ;;  %v1790_v9 = vld [vmem:[#allocation5 + $0xc0] ss:$24 sps:$4 sm:$0xff]   ;;  %v1791_v10 = vld [vmem:[#allocation5 + $0xf4] ss:$24 sps:$4 sm:$0xff]  }
  0x3c   :  { %v1793_v11 = vld [vmem:[#allocation5 + $0xf0] ss:$24 sps:$4 sm:$0xff]   ;;  %v1794_v12 = vld [vmem:[#allocation5 + $0x124] ss:$24 sps:$4 sm:$0xff]   ;;  %v1796_v16 = vld [vmem:[#allocation5 + $0x120] ss:$24 sps:$4 sm:$0xff]  }
  0x3d   :  { %v63_v13 = vld [vmem:[#allocation2 + $0x8] sm:$0xff]  ;;  %v65_v14 = vld [vmem:[#allocation2 + $0x18] sm:$0xff]  ;;  %v62_v35 = vld [vmem:[#allocation2] sm:$0xff]  ;;  %s2167_s10 = smov [#allocation8]  }
  0x3e   :  { %679 = vmatpush1.bf16.msra.mxu0 %v1781_v3  ;;  %v2237_v15 = vpack.c.bf16 %v65_v14, %v63_v13  ;;  %v1797_v17 = vld [vmem:[#allocation5 + $0x154] ss:$24 sps:$4 sm:$0xff]   ;;  %v1799_v18 = vld [vmem:[#allocation5 + $0x150] ss:$24 sps:$4 sm:$0xff]   ;;  %v1800_v19 = vld [vmem:[#allocation5 + $0x184] ss:$24 sps:$4 sm:$0xff]  }
  0x3f   :  { %680 = vmatprep.subr.bf16.mxu0 %v1782_v4  ;;  %v1802_v20 = vld [vmem:[#allocation5 + $0x180] ss:$24 sps:$4 sm:$0xff]   ;;  %v1803_v21 = vld [vmem:[#allocation5 + $0x1b4] ss:$24 sps:$4 sm:$0xff]   ;;  %v1805_v22 = vld [vmem:[#allocation5 + $0x1b0] ss:$24 sps:$4 sm:$0xff]  }
  0x40   :  { %708 = vmatprep.mubr.bf16.mxu0 %v2237_v15  ;;  %v1806_v23 = vld [vmem:[#allocation5 + $0x1e4] ss:$24 sps:$4 sm:$0xff]   ;;  %v1808_v24 = vld [vmem:[#allocation5 + $0x1e0] ss:$24 sps:$4 sm:$0xff]   ;;  %v1809_v25 = vld [vmem:[#allocation5 + $0x214] ss:$24 sps:$4 sm:$0xff]  }
  0x41   :  { %v1811_v26 = vld [vmem:[#allocation5 + $0x210] ss:$24 sps:$4 sm:$0xff]   ;;  %v1812_v27 = vld [vmem:[#allocation5 + $0x244] ss:$24 sps:$4 sm:$0xff]   ;;  %v1814_v28 = vld [vmem:[#allocation5 + $0x240] ss:$24 sps:$4 sm:$0xff]  }
  0x42   :  { %681 = vmatpush1.bf16.msra.mxu0 %v1784_v5  ;;  %v1815_v29 = vld [vmem:[#allocation5 + $0x274] ss:$24 sps:$4 sm:$0xff]   ;;  %v1817_v30 = vld [vmem:[#allocation5 + $0x270] ss:$24 sps:$4 sm:$0xff]   ;;  %v1818_v31 = vld [vmem:[#allocation5 + $0x2a4] ss:$24 sps:$4 sm:$0xff]  }
  0x43   :  { %682 = vmatprep.subr.bf16.mxu0 %v1785_v6  ;;  %v1820_v32 = vld [vmem:[#allocation5 + $0x2a0] ss:$24 sps:$4 sm:$0xff]   ;;  %v1821_v33 = vld [vmem:[#allocation5 + $0x2d4] ss:$24 sps:$4 sm:$0xff]   ;;  %v1823_v34 = vld [vmem:[#allocation5 + $0x2d0] ss:$24 sps:$4 sm:$0xff]  }
  0x44   :  { %v64_v36 = vld [vmem:[#allocation2 + $0x10] sm:$0xff]  ;;  %v1826_v37 = vld [vmem:[#allocation5 + $0xc] ss:$24 sps:$4 sm:$0xff]   ;;  %v1824_v39 = vld [vmem:[#allocation5 + $0x8] ss:$24 sps:$4 sm:$0xff]   ;;  %s1549_s11 = sshll.u32 %s2167_s10, 4  ;;  %s1550_s11 = int_to_ptr.vmem [resolvable:$true] %s1549_s11 }
  0x45   :  { %v2240_v38 = vpack.c.bf16 %v64_v36, %v62_v35  ;;  %v1829_v40 = vld [vmem:[#allocation5 + $0x3c] ss:$24 sps:$4 sm:$0xff]   ;;  %v1920_v41 = vld [vmem:[#allocation7 + $0x4] ss:$8 sps:$4 sm:$0xff]   ;;  %v1922_v42 = vld [vmem:[#allocation7] ss:$8 sps:$4 sm:$0xff]   ;;  %p2135_p11 = scmp.lt.s32.totalorder %s1550_s11, %s1550_s11 }
  0x46   :  { %683 = vmatpush1.bf16.msra.mxu0 %v1787_v7  ;;  %v1827_v43 = vld [vmem:[#allocation5 + $0x38] ss:$24 sps:$4 sm:$0xff]   ;;  %v1923_v44 = vld [vmem:[#allocation7 + $0x14] ss:$8 sps:$4 sm:$0xff]   ;;  %v1832_v45 = vld [vmem:[#allocation5 + $0x6c] ss:$24 sps:$4 sm:$0xff]   ;;  %1411 = vmatprep.subr.bf16.mxu1 %v1920_v41 }
  0x47   :  { %684 = vmatprep.subr.bf16.mxu0 %v1788_v8  ;;  %1412 = vmatpush1.bf16.msra.mxu1 %v1922_v42  ;;  %v1925_v46 = vld [vmem:[#allocation7 + $0x10] ss:$8 sps:$4 sm:$0xff]   ;;  %v1926_v47 = vld [vmem:[#allocation7 + $0x24] ss:$8 sps:$4 sm:$0xff]   ;;  %v1830_v48 = vld [vmem:[#allocation5 + $0x68] ss:$24 sps:$4 sm:$0xff]  }
  0x48   :  { %1413 = vmatprep.subr.bf16.mxu1 %v1923_v44  ;;  %v1835_v49 = vld [vmem:[#allocation5 + $0x9c] ss:$24 sps:$4 sm:$0xff]   ;;  %v1928_v50 = vld [vmem:[#allocation7 + $0x20] ss:$8 sps:$4 sm:$0xff]   ;;  %v1833_v52 = vld [vmem:[#allocation5 + $0x98] ss:$24 sps:$4 sm:$0xff]  }
  0x49   :  { %v1929_v51 = vld [vmem:[#allocation7 + $0x34] ss:$8 sps:$4 sm:$0xff]   ;;  %v1838_v53 = vld [vmem:[#allocation5 + $0xcc] ss:$24 sps:$4 sm:$0xff]   ;;  %v1931_v54 = vld [vmem:[#allocation7 + $0x30] ss:$8 sps:$4 sm:$0xff]  }
  0x4a   :  { %685 = vmatpush1.bf16.msra.mxu0 %v1790_v9  ;;  %v1932_v55 = vld [vmem:[#allocation7 + $0x44] ss:$8 sps:$4 sm:$0xff]   ;;  %v1836_v56 = vld [vmem:[#allocation5 + $0xc8] ss:$24 sps:$4 sm:$0xff]   ;;  %v1841_v57 = vld [vmem:[#allocation5 + $0xfc] ss:$24 sps:$4 sm:$0xff]  }
  0x4b   :  { %686 = vmatprep.subr.bf16.mxu0 %v1791_v10  ;;  %1414 = vmatpush1.bf16.msra.mxu1 %v1925_v46  ;;  %v1934_v58 = vld [vmem:[#allocation7 + $0x40] ss:$8 sps:$4 sm:$0xff]   ;;  %v1839_v59 = vld [vmem:[#allocation5 + $0xf8] ss:$24 sps:$4 sm:$0xff]   ;;  %v1935_v60 = vld [vmem:[#allocation7 + $0x54] ss:$8 sps:$4 sm:$0xff]  }
  0x4c   :  { %1415 = vmatprep.subr.bf16.mxu1 %v1926_v47  ;;  %v1844_v61 = vld [vmem:[#allocation5 + $0x12c] ss:$24 sps:$4 sm:$0xff]   ;;  %v1937_v62 = vld [vmem:[#allocation7 + $0x50] ss:$8 sps:$4 sm:$0xff]   ;;  %v1842_v0 = vld [vmem:[#allocation5 + $0x128] ss:$24 sps:$4 sm:$0xff]  }
  0x4d   :  { %v1938_v63 = vld [vmem:[#allocation7 + $0x64] ss:$8 sps:$4 sm:$0xff]   ;;  %v1847_v1 = vld [vmem:[#allocation5 + $0x15c] ss:$24 sps:$4 sm:$0xff]   ;;  %v1940_v2 = vld [vmem:[#allocation7 + $0x60] ss:$8 sps:$4 sm:$0xff]  }
  0x4e   :  { %687 = vmatpush1.bf16.msra.mxu0 %v1793_v11  ;;  %v1941_v3 = vld [vmem:[#allocation7 + $0x74] ss:$8 sps:$4 sm:$0xff]   ;;  %v1845_v4 = vld [vmem:[#allocation5 + $0x158] ss:$24 sps:$4 sm:$0xff]   ;;  %v1850_v5 = vld [vmem:[#allocation5 + $0x18c] ss:$24 sps:$4 sm:$0xff]  }
  0x4f   :  { %688 = vmatprep.subr.bf16.mxu0 %v1794_v12  ;;  %1416 = vmatpush1.bf16.msra.mxu1 %v1928_v50  ;;  %v1943_v6 = vld [vmem:[#allocation7 + $0x70] ss:$8 sps:$4 sm:$0xff]   ;;  %v1944_v7 = vld [vmem:[#allocation7 + $0x84] ss:$8 sps:$4 sm:$0xff]   ;;  %v1848_v8 = vld [vmem:[#allocation5 + $0x188] ss:$24 sps:$4 sm:$0xff]  }
  0x50   :  { %1417 = vmatprep.subr.bf16.mxu1 %v1929_v51  ;;  %v1853_v9 = vld [vmem:[#allocation5 + $0x1bc] ss:$24 sps:$4 sm:$0xff]   ;;  %v1946_v10 = vld [vmem:[#allocation7 + $0x80] ss:$8 sps:$4 sm:$0xff]   ;;  %v1851_v12 = vld [vmem:[#allocation5 + $0x1b8] ss:$24 sps:$4 sm:$0xff]  }
  0x51   :  { %v1947_v11 = vld [vmem:[#allocation7 + $0x94] ss:$8 sps:$4 sm:$0xff]   ;;  %v1856_v13 = vld [vmem:[#allocation5 + $0x1ec] ss:$24 sps:$4 sm:$0xff]   ;;  %v1949_v14 = vld [vmem:[#allocation7 + $0x90] ss:$8 sps:$4 sm:$0xff]  }
  0x52   :  { %689 = vmatpush1.bf16.msra.mxu0 %v1796_v16  ;;  %v1950_v16 = vld [vmem:[#allocation7 + $0xa4] ss:$8 sps:$4 sm:$0xff]   ;;  %v1872_v35 = vld [vmem:[#allocation5 + $0x10] ss:$24 sps:$4 sm:$0xff]   ;;  %v1881_v42 = vld [vmem:[#allocation5 + $0xa0] ss:$24 sps:$4 sm:$0xff]  }
  0x53   :  { %690 = vmatprep.subr.bf16.mxu0 %v1797_v17  ;;  %1418 = vmatpush1.bf16.msra.mxu1 %v1931_v54  ;;  %v1854_v17 = vld [vmem:[#allocation5 + $0x1e8] ss:$24 sps:$4 sm:$0xff]   ;;  %v1877_v36 = vld [vmem:[#allocation5 + $0x44] ss:$24 sps:$4 sm:$0xff]   ;;  %v1961_v47 = vld [vmem:[#allocation7 + $0xd0] ss:$8 sps:$4 sm:$0xff]  }
  0x54   :  { %1419 = vmatprep.subr.bf16.mxu1 %v1932_v55  ;;  %v1883_v41 = vld [vmem:[#allocation5 + $0xa4] ss:$24 sps:$4 sm:$0xff]   ;;  %v1884_v44 = vld [vmem:[#allocation5 + $0xd0] ss:$24 sps:$4 sm:$0xff]   ;;  %v1887_v46 = vld [vmem:[#allocation5 + $0x100] ss:$24 sps:$4 sm:$0xff]  }
  0x55   :  { %v1964_v50 = vld [vmem:[#allocation7 + $0xe0] ss:$8 sps:$4 sm:$0xff]   ;;  %v1895_v51 = vld [vmem:[#allocation5 + $0x164] ss:$24 sps:$4 sm:$0xff]   ;;  %v1967_v54 = vld [vmem:[#allocation7 + $0xf0] ss:$8 sps:$4 sm:$0xff]  }
  0x56   :  { %691 = vmatpush1.bf16.msra.mxu0 %v1799_v18  ;;  %v1859_v18 = vld [vmem:[#allocation5 + $0x21c] ss:$24 sps:$4 sm:$0xff]  }
  0x57   :  { %692 = vmatprep.subr.bf16.mxu0 %v1800_v19  ;;  %1420 = vmatpush1.bf16.msra.mxu1 %v1934_v58  ;;  %v1952_v19 = vld [vmem:[#allocation7 + $0xa0] ss:$8 sps:$4 sm:$0xff]   ;;  %v1898_v55 = vld [vmem:[#allocation5 + $0x194] ss:$24 sps:$4 sm:$0xff]   ;;  %v1901_v58 = vld [vmem:[#allocation5 + $0x1c4] ss:$24 sps:$4 sm:$0xff]  }
  0x58   :  { %1421 = vmatprep.subr.bf16.mxu1 %v1935_v60  ;;  %v1904_v60 = vld [vmem:[#allocation5 + $0x1f4] ss:$24 sps:$4 sm:$0xff]  }
  0x5a   :  { %693 = vmatpush1.bf16.msra.mxu0 %v1802_v20  ;;  %v1953_v20 = vld [vmem:[#allocation7 + $0xb4] ss:$8 sps:$4 sm:$0xff]  }
  0x5b   :  { %694 = vmatprep.subr.bf16.mxu0 %v1803_v21  ;;  %1422 = vmatpush1.bf16.msra.mxu1 %v1937_v62  ;;  %v1857_v21 = vld [vmem:[#allocation5 + $0x218] ss:$24 sps:$4 sm:$0xff]   ;;  %v1907_v62 = vld [vmem:[#allocation5 + $0x224] ss:$24 sps:$4 sm:$0xff]  }
  0x5c   :  { %1423 = vmatprep.subr.bf16.mxu1 %v1938_v63  ;;  %v1905_v63 = vld [vmem:[#allocation5 + $0x220] ss:$24 sps:$4 sm:$0xff]  }
  0x5e   :  { %695 = vmatpush1.bf16.msra.mxu0 %v1805_v22  ;;  %v1862_v22 = vld [vmem:[#allocation5 + $0x24c] ss:$24 sps:$4 sm:$0xff]  }
  0x5f   :  { %696 = vmatprep.subr.bf16.mxu0 %v1806_v23  ;;  %1424 = vmatpush1.bf16.msra.mxu1 %v1940_v2  ;;  %v1955_v23 = vld [vmem:[#allocation7 + $0xb0] ss:$8 sps:$4 sm:$0xff]   ;;  %v1913_v2 = vld [vmem:[#allocation5 + $0x284] ss:$24 sps:$4 sm:$0xff]  }
  0x60   :  { %1425 = vmatprep.subr.bf16.mxu1 %v1941_v3  ;;  %v1911_v3 = vld [vmem:[#allocation5 + $0x280] ss:$24 sps:$4 sm:$0xff]  }
  0x62   :  { %697 = vmatpush1.bf16.msra.mxu0 %v1808_v24  ;;  %v1956_v24 = vld [vmem:[#allocation7 + $0xc4] ss:$8 sps:$4 sm:$0xff]  }
  0x63   :  { %698 = vmatprep.subr.bf16.mxu0 %v1809_v25  ;;  %1426 = vmatpush1.bf16.msra.mxu1 %v1943_v6  ;;  %v1860_v25 = vld [vmem:[#allocation5 + $0x248] ss:$24 sps:$4 sm:$0xff]   ;;  %v1919_v6 = vld [vmem:[#allocation5 + $0x2e4] ss:$24 sps:$4 sm:$0xff]  }
  0x64   :  { %1427 = vmatprep.subr.bf16.mxu1 %v1944_v7  ;;  %v1917_v7 = vld [vmem:[#allocation5 + $0x2e0] ss:$24 sps:$4 sm:$0xff]  }
  0x66   :  { %699 = vmatpush1.bf16.msra.mxu0 %v1811_v26  ;;  %v1865_v26 = vld [vmem:[#allocation5 + $0x27c] ss:$24 sps:$4 sm:$0xff]  }
  0x67   :  { %700 = vmatprep.subr.bf16.mxu0 %v1812_v27  ;;  %1428 = vmatpush1.bf16.msra.mxu1 %v1946_v10  ;;  %v1958_v27 = vld [vmem:[#allocation7 + $0xc0] ss:$8 sps:$4 sm:$0xff]  }
  0x68   :  { %1429 = vmatprep.subr.bf16.mxu1 %v1947_v11  ;;  %v2253_v11 = vld [vmem:[%s2294_s2] sm:$0x3f] }
  0x6a   :  { %701 = vmatpush1.bf16.msra.mxu0 %v1814_v28  ;;  %v1959_v28 = vld [vmem:[#allocation7 + $0xd4] ss:$8 sps:$4 sm:$0xff]  }
  0x6b   :  { %702 = vmatprep.subr.bf16.mxu0 %v1815_v29  ;;  %1430 = vmatpush1.bf16.msra.mxu1 %v1949_v14  ;;  %v1863_v29 = vld [vmem:[#allocation5 + $0x278] ss:$24 sps:$4 sm:$0xff]  }
  0x6c   :  { %1431 = vmatprep.subr.bf16.mxu1 %v1950_v16 }
  0x6e   :  { %703 = vmatpush1.bf16.msra.mxu0 %v1817_v30  ;;  %v1868_v30 = vld [vmem:[#allocation5 + $0x2ac] ss:$24 sps:$4 sm:$0xff]  }
  0x6f   :  { %704 = vmatprep.subr.bf16.mxu0 %v1818_v31  ;;  %1432 = vmatpush1.bf16.msra.mxu1 %v1952_v19  ;;  %v1866_v31 = vld [vmem:[#allocation5 + $0x2a8] ss:$24 sps:$4 sm:$0xff]  }
  0x70   :  { %1433 = vmatprep.subr.bf16.mxu1 %v1953_v20 }
  0x72   :  { %705 = vmatpush1.bf16.msra.mxu0 %v1820_v32  ;;  %v1871_v32 = vld [vmem:[#allocation5 + $0x2dc] ss:$24 sps:$4 sm:$0xff]  }
  0x73   :  { %706 = vmatprep.subr.bf16.mxu0 %v1821_v33  ;;  %1434 = vmatpush1.bf16.msra.mxu1 %v1955_v23  ;;  %v1869_v33 = vld [vmem:[#allocation5 + $0x2d8] ss:$24 sps:$4 sm:$0xff]  }
  0x74   :  { %1435 = vmatprep.subr.bf16.mxu1 %v1956_v24 }
  0x76   :  { %707 = vmatpush1.bf16.msra.mxu0 %v1823_v34  ;;  %v1874_v34 = vld [vmem:[#allocation5 + $0x14] ss:$24 sps:$4 sm:$0xff]  }
  0x77   :  { %719 = vmatprep.subr.bf16.mxu0 %v1826_v37  ;;  %1436 = vmatpush1.bf16.msra.mxu1 %v1958_v27  ;;  %v1875_v37 = vld [vmem:[#allocation5 + $0x40] ss:$24 sps:$4 sm:$0xff]  }
  0x78   :  { %1437 = vmatprep.subr.bf16.mxu1 %v1959_v28 }
  0x79   :  { %709 = vmatmul.mubr.bf16.vlgmr.msra.gmra.mrb[0].mxu0 %v2240_v38 }
  0x7a   :  { %720 = vmatpush1.bf16.msra.mxu0 %v1824_v39  ;;  %751 = vmatprep.mubr.bf16.mxu0 %v2237_v15  ;;  %v1880_v39 = vld [vmem:[#allocation5 + $0x74] ss:$24 sps:$4 sm:$0xff]  }
  0x7b   :  { %721 = vmatprep.subr.bf16.mxu0 %v1829_v40  ;;  %v1878_v40 = vld [vmem:[#allocation5 + $0x70] ss:$24 sps:$4 sm:$0xff]   ;;  %1438 = vmatpush1.bf16.msra.mxu1 %v1961_v47  ;;  %v1997_v47 = vld [vmem:[#allocation7 + $0x194] ss:$8 sps:$4 sm:$0xff]  }
  0x7e   :  { %722 = vmatpush1.bf16.msra.mxu0 %v1827_v43  ;;  %v1886_v43 = vld [vmem:[#allocation5 + $0xd4] ss:$24 sps:$4 sm:$0xff]  }
  0x7f   :  { %723 = vmatprep.subr.bf16.mxu0 %v1832_v45  ;;  %v1889_v45 = vld [vmem:[#allocation5 + $0x104] ss:$24 sps:$4 sm:$0xff]  }
  0x82   :  { %724 = vmatpush1.bf16.msra.mxu0 %v1830_v48  ;;  %v1892_v48 = vld [vmem:[#allocation5 + $0x134] ss:$24 sps:$4 sm:$0xff]  }
  0x83   :  { %725 = vmatprep.subr.bf16.mxu0 %v1835_v49  ;;  %v1890_v49 = vld [vmem:[#allocation5 + $0x130] ss:$24 sps:$4 sm:$0xff]  }
  0x86   :  { %726 = vmatpush1.bf16.msra.mxu0 %v1833_v52  ;;  %v1965_v52 = vld [vmem:[#allocation7 + $0xf4] ss:$8 sps:$4 sm:$0xff]  }
  0x87   :  { %727 = vmatprep.subr.bf16.mxu0 %v1838_v53  ;;  %v1893_v53 = vld [vmem:[#allocation5 + $0x160] ss:$24 sps:$4 sm:$0xff]  }
  0x8a   :  { %728 = vmatpush1.bf16.msra.mxu0 %v1836_v56  ;;  %v1970_v56 = vld [vmem:[#allocation7 + $0x104] ss:$8 sps:$4 sm:$0xff]  }
  0x8b   :  { %729 = vmatprep.subr.bf16.mxu0 %v1841_v57  ;;  %v1896_v57 = vld [vmem:[#allocation5 + $0x190] ss:$24 sps:$4 sm:$0xff]  }
  0x8e   :  { %730 = vmatpush1.bf16.msra.mxu0 %v1839_v59  ;;  %v1899_v59 = vld [vmem:[#allocation5 + $0x1c0] ss:$24 sps:$4 sm:$0xff]  }
  0x8f   :  { %731 = vmatprep.subr.bf16.mxu0 %v1844_v61  ;;  %v1902_v61 = vld [vmem:[#allocation5 + $0x1f0] ss:$24 sps:$4 sm:$0xff]  }
  0x92   :  { %732 = vmatpush1.bf16.msra.mxu0 %v1842_v0  ;;  %v1910_v0 = vld [vmem:[#allocation5 + $0x254] ss:$24 sps:$4 sm:$0xff]  }
  0x93   :  { %733 = vmatprep.subr.bf16.mxu0 %v1847_v1  ;;  %v1908_v1 = vld [vmem:[#allocation5 + $0x250] ss:$24 sps:$4 sm:$0xff]  }
  0x96   :  { %734 = vmatpush1.bf16.msra.mxu0 %v1845_v4  ;;  %v1916_v4 = vld [vmem:[#allocation5 + $0x2b4] ss:$24 sps:$4 sm:$0xff]  }
  0x97   :  { %735 = vmatprep.subr.bf16.mxu0 %v1850_v5  ;;  %v1914_v5 = vld [vmem:[#allocation5 + $0x2b0] ss:$24 sps:$4 sm:$0xff]  }
  0x9a   :  { %736 = vmatpush1.bf16.msra.mxu0 %v1848_v8  ;;  %v166_v8 = vlaneseq }
  0x9b   :  { %737 = vmatprep.subr.bf16.mxu0 %v1853_v9 }
  0x9c   :  { %v2247_v9 = vshrl.u32 %v166_v8, 7  ;;  %v2013_v8 = vld [vmem:[#allocation7 + $0x1f0] ss:$8 sps:$4 sm:$0xff]  }
  0x9e   :  { %738 = vmatpush1.bf16.msra.mxu0 %v1851_v12  ;;  %v168_v10 = vsub.s32 0, %v2247_v9  ;;  %v172_v12 = vsub.s32 1, %v2247_v9 }
  0x9f   :  { %739 = vmatprep.subr.bf16.mxu0 %v1856_v13 }
  0xa0   :  { %v169_v13 = vrot.slane %v2253_v11, %v168_v10 }
  0xa2   :  { %740 = vmatpush1.bf16.msra.mxu0 %v1854_v17 }
  0xa3   :  { %741 = vmatprep.subr.bf16.mxu0 %v1859_v18 }
  0xa6   :  { %742 = vmatpush1.bf16.msra.mxu0 %v1857_v21 }
  0xa7   :  { %743 = vmatprep.subr.bf16.mxu0 %v1862_v22 }
  0xaa   :  { %744 = vmatpush1.bf16.msra.mxu0 %v1860_v25 }
  0xab   :  { %745 = vmatprep.subr.bf16.mxu0 %v1865_v26 }
  0xae   :  { %746 = vmatpush1.bf16.msra.mxu0 %v1863_v29  ;;  %v1968_v29 = vld [vmem:[#allocation7 + $0x100] ss:$8 sps:$4 sm:$0xff]  }
  0xaf   :  { %747 = vmatprep.subr.bf16.mxu0 %v1868_v30  ;;  %v1973_v30 = vld [vmem:[#allocation7 + $0x114] ss:$8 sps:$4 sm:$0xff]  }
  0xb2   :  { %748 = vmatpush1.bf16.msra.mxu0 %v1866_v31  ;;  %v1971_v31 = vld [vmem:[#allocation7 + $0x110] ss:$8 sps:$4 sm:$0xff]  }
  0xb3   :  { %749 = vmatprep.subr.bf16.mxu0 %v1871_v32  ;;  %v1976_v32 = vld [vmem:[#allocation7 + $0x124] ss:$8 sps:$4 sm:$0xff]  }
  0xb6   :  { %750 = vmatpush1.bf16.msra.mxu0 %v1869_v33  ;;  %v1974_v33 = vld [vmem:[#allocation7 + $0x120] ss:$8 sps:$4 sm:$0xff]  }
  0xb7   :  { %762 = vmatprep.subr.bf16.mxu0 %v1874_v34  ;;  %v1979_v34 = vld [vmem:[#allocation7 + $0x134] ss:$8 sps:$4 sm:$0xff]  }
  0xb9   :  { %752 = vmatmul.mubr.bf16.vlgmr.msra.gmra.mrb[4].mxu0 %v2240_v38 }
  0xba   :  { %763 = vmatpush1.bf16.msra.mxu0 %v1872_v35  ;;  %794 = vmatprep.mubr.bf16.mxu0 %v2237_v15  ;;  %v1962_v15 = vld [vmem:[#allocation7 + $0xe4] ss:$8 sps:$4 sm:$0xff]   ;;  %v1977_v35 = vld [vmem:[#allocation7 + $0x130] ss:$8 sps:$4 sm:$0xff]  }
  0xbb   :  { %764 = vmatprep.subr.bf16.mxu0 %v1877_v36  ;;  %1439 = vmatprep.subr.bf16.mxu1 %v1962_v15  ;;  %v1982_v36 = vld [vmem:[#allocation7 + $0x144] ss:$8 sps:$4 sm:$0xff]  }
  0xbc   :  { %1440 = vmatpush1.bf16.msra.mxu1 %v1964_v50  ;;  %v2000_v15 = vld [vmem:[#allocation7 + $0x1a4] ss:$8 sps:$4 sm:$0xff]   ;;  %v2003_v50 = vld [vmem:[#allocation7 + $0x1b4] ss:$8 sps:$4 sm:$0xff]  }
  0xbd   :  { %1441 = vmatprep.subr.bf16.mxu1 %v1965_v52  ;;  %v2006_v52 = vld [vmem:[#allocation7 + $0x1c4] ss:$8 sps:$4 sm:$0xff]  }
  0xbe   :  { %765 = vmatpush1.bf16.msra.mxu0 %v1875_v37  ;;  %v1980_v37 = vld [vmem:[#allocation7 + $0x140] ss:$8 sps:$4 sm:$0xff]  }
  0xbf   :  { %766 = vmatprep.subr.bf16.mxu0 %v1880_v39  ;;  %v1985_v39 = vld [vmem:[#allocation7 + $0x154] ss:$8 sps:$4 sm:$0xff]  }
  0xc0   :  { %1442 = vmatpush1.bf16.msra.mxu1 %v1967_v54  ;;  %v2009_v54 = vld [vmem:[#allocation7 + $0x1d4] ss:$8 sps:$4 sm:$0xff]  }
  0xc1   :  { %1454 = vmatprep.subr.bf16.mxu1 %v1970_v56  ;;  %v180_v56 = vsub.s32 3, %v2247_v9 }
  0xc2   :  { %767 = vmatpush1.bf16.msra.mxu0 %v1878_v40  ;;  %v1983_v40 = vld [vmem:[#allocation7 + $0x150] ss:$8 sps:$4 sm:$0xff]  }
  0xc3   :  { %768 = vmatprep.subr.bf16.mxu0 %v1883_v41  ;;  %v1988_v41 = vld [vmem:[#allocation7 + $0x164] ss:$8 sps:$4 sm:$0xff]  }
  0xc6   :  { %769 = vmatpush1.bf16.msra.mxu0 %v1881_v42  ;;  %v1986_v42 = vld [vmem:[#allocation7 + $0x160] ss:$8 sps:$4 sm:$0xff]  }
  0xc7   :  { %770 = vmatprep.subr.bf16.mxu0 %v1886_v43  ;;  %v1991_v43 = vld [vmem:[#allocation7 + $0x174] ss:$8 sps:$4 sm:$0xff]  }
  0xca   :  { %771 = vmatpush1.bf16.msra.mxu0 %v1884_v44  ;;  %v1989_v44 = vld [vmem:[#allocation7 + $0x170] ss:$8 sps:$4 sm:$0xff]  }
  0xcb   :  { %772 = vmatprep.subr.bf16.mxu0 %v1889_v45  ;;  %v1994_v45 = vld [vmem:[#allocation7 + $0x184] ss:$8 sps:$4 sm:$0xff]  }
  0xce   :  { %773 = vmatpush1.bf16.msra.mxu0 %v1887_v46  ;;  %v1992_v46 = vld [vmem:[#allocation7 + $0x180] ss:$8 sps:$4 sm:$0xff]  }
  0xcf   :  { %774 = vmatprep.subr.bf16.mxu0 %v1892_v48  ;;  %v1995_v48 = vld [vmem:[#allocation7 + $0x190] ss:$8 sps:$4 sm:$0xff]  }
  0xd2   :  { %775 = vmatpush1.bf16.msra.mxu0 %v1890_v49  ;;  %v1998_v49 = vld [vmem:[#allocation7 + $0x1a0] ss:$8 sps:$4 sm:$0xff]  }
  0xd3   :  { %776 = vmatprep.subr.bf16.mxu0 %v1895_v51  ;;  %v2001_v51 = vld [vmem:[#allocation7 + $0x1b0] ss:$8 sps:$4 sm:$0xff]  }
  0xd6   :  { %777 = vmatpush1.bf16.msra.mxu0 %v1893_v53  ;;  %v2004_v53 = vld [vmem:[#allocation7 + $0x1c0] ss:$8 sps:$4 sm:$0xff]  }
  0xd7   :  { %778 = vmatprep.subr.bf16.mxu0 %v1898_v55  ;;  %v176_v55 = vsub.s32 2, %v2247_v9 }
  0xda   :  { %779 = vmatpush1.bf16.msra.mxu0 %v1896_v57  ;;  %v2007_v57 = vld [vmem:[#allocation7 + $0x1d0] ss:$8 sps:$4 sm:$0xff]  }
  0xdb   :  { %780 = vmatprep.subr.bf16.mxu0 %v1901_v58  ;;  %v177_v58 = vrot.slane %v2253_v11, %v176_v55  ;;  %v2063_v55 = vld [vmem:[#allocation7 + $0x2f4] ss:$8 sps:$4 sm:$0xff]  }
  0xde   :  { %781 = vmatpush1.bf16.msra.mxu0 %v1899_v59  ;;  %v2012_v59 = vld [vmem:[#allocation7 + $0x1e4] ss:$8 sps:$4 sm:$0xff]  }
  0xdf   :  { %782 = vmatprep.subr.bf16.mxu0 %v1904_v60  ;;  %v181_v60 = vrot.slane %v2253_v11, %v180_v56 }
  0xe2   :  { %783 = vmatpush1.bf16.msra.mxu0 %v1902_v61 }
  0xe3   :  { %784 = vmatprep.subr.bf16.mxu0 %v1907_v62  ;;  %v2010_v62 = vld [vmem:[#allocation7 + $0x1e0] ss:$8 sps:$4 sm:$0xff]  }
  0xe6   :  { %785 = vmatpush1.bf16.msra.mxu0 %v1905_v63 }
  0xe7   :  { %786 = vmatprep.subr.bf16.mxu0 %v1910_v0 }
  0xea   :  { %787 = vmatpush1.bf16.msra.mxu0 %v1908_v1  ;;  %v2015_v1 = vld [vmem:[#allocation7 + $0x1f4] ss:$8 sps:$4 sm:$0xff]  }
  0xeb   :  { %788 = vmatprep.subr.bf16.mxu0 %v1913_v2 }
  0xee   :  { %789 = vmatpush1.bf16.msra.mxu0 %v1911_v3 }
  0xef   :  { %790 = vmatprep.subr.bf16.mxu0 %v1916_v4 }
  0xf2   :  { %791 = vmatpush1.bf16.msra.mxu0 %v1914_v5 }
  0xf3   :  { %792 = vmatprep.subr.bf16.mxu0 %v1919_v6 }
  0xf6   :  { %793 = vmatpush1.bf16.msra.mxu0 %v1917_v7 }
  0xf9   :  { %795 = vmatmul.mubr.bf16.vlgmr.msra.gmra.mrb[8].mxu0 %v2240_v38  ;;  %v173_v38 = vrot.slane %v2253_v11, %v172_v12 }
 0x14c   :  { %v710_v14 = vpop.f32.mrb[0].mxu0 }
 0x14d   :  { %v711_v16 = vadd.f32 %v710_v14, %v169_v13  ;;  %v712_v17 = vpop.f32.mrb[1].mxu0 }
 0x14e   :  { %v713_v18 = vadd.f32 %v712_v17, %v173_v38  ;;  %v714_v19 = vpop.f32.mrb[2].mxu0 }
 0x14f   :  { %v805_v20 = vmax.f32 %v711_v16, 0.0  ;;  %v715_v21 = vadd.f32 %v714_v19, %v169_v13  ;;  %v716_v22 = vpop.f32.mrb[3].mxu0  ;;  %v2016_v19 = vld [vmem:[#allocation7 + $0x200] ss:$8 sps:$4 sm:$0xff]  }
 0x150   :  { %v717_v23 = vadd.f32 %v716_v22, %v173_v38  ;;  %v806_v25 = vmax.f32 %v713_v18, 0.0  ;;  %v2018_v38 = vld [vmem:[#allocation7 + $0x204] ss:$8 sps:$4 sm:$0xff]  }
 0x151   :  { %v811_v24 = vmax.f32 %v715_v21, 0.0  ;;  %v2019_v21 = vld [vmem:[#allocation7 + $0x210] ss:$8 sps:$4 sm:$0xff]   ;;  %v2024_v22 = vld [vmem:[#allocation7 + $0x224] ss:$8 sps:$4 sm:$0xff]  }
 0x152   :  { %v812_v26 = vmax.f32 %v717_v23, 0.0  ;;  %v2022_v23 = vld [vmem:[#allocation7 + $0x220] ss:$8 sps:$4 sm:$0xff]  }
 0x153   :  { %v913_v27 = vpack.c.bf16 %v811_v24, %v805_v20  ;;  %v2021_v20 = vld [vmem:[#allocation7 + $0x214] ss:$8 sps:$4 sm:$0xff]  }
 0x154   :  { %v914_v28 = vpack.c.bf16 %v812_v26, %v806_v25  ;;  %v2027_v24 = vld [vmem:[#allocation7 + $0x234] ss:$8 sps:$4 sm:$0xff]   ;;  %v2025_v25 = vld [vmem:[#allocation7 + $0x230] ss:$8 sps:$4 sm:$0xff]   ;;  %v2030_v26 = vld [vmem:[#allocation7 + $0x244] ss:$8 sps:$4 sm:$0xff]  }
 0x156   :  { %1443 = vmatprep.mubr.bf16.mxu1 %v914_v28  ;;  %v2033_v28 = vld [vmem:[#allocation7 + $0x254] ss:$8 sps:$4 sm:$0xff]  }
 0x157   :  { %1444 = vmatmul.mubr.bf16.vlgmr.msra.gmra.mrb[0].mxu1 %v913_v27  ;;  %v2028_v27 = vld [vmem:[#allocation7 + $0x240] ss:$8 sps:$4 sm:$0xff]  }
 0x158   :  { %1455 = vmatpush1.bf16.msra.mxu1 %v1968_v29  ;;  %v2031_v29 = vld [vmem:[#allocation7 + $0x250] ss:$8 sps:$4 sm:$0xff]  }
 0x159   :  { %1456 = vmatprep.subr.bf16.mxu1 %v1973_v30  ;;  %v2036_v30 = vld [vmem:[#allocation7 + $0x264] ss:$8 sps:$4 sm:$0xff]  }
 0x15c   :  { %1457 = vmatpush1.bf16.msra.mxu1 %v1971_v31  ;;  %v2034_v31 = vld [vmem:[#allocation7 + $0x260] ss:$8 sps:$4 sm:$0xff]  }
 0x15d   :  { %1458 = vmatprep.subr.bf16.mxu1 %v1976_v32  ;;  %v2039_v32 = vld [vmem:[#allocation7 + $0x274] ss:$8 sps:$4 sm:$0xff]  }
 0x160   :  { %1459 = vmatpush1.bf16.msra.mxu1 %v1974_v33  ;;  %v2037_v33 = vld [vmem:[#allocation7 + $0x270] ss:$8 sps:$4 sm:$0xff]  }
 0x161   :  { %1460 = vmatprep.subr.bf16.mxu1 %v1979_v34  ;;  %v2042_v34 = vld [vmem:[#allocation7 + $0x284] ss:$8 sps:$4 sm:$0xff]  }
 0x164   :  { %1461 = vmatpush1.bf16.msra.mxu1 %v1977_v35  ;;  %v2040_v35 = vld [vmem:[#allocation7 + $0x280] ss:$8 sps:$4 sm:$0xff]  }
 0x165   :  { %1462 = vmatprep.subr.bf16.mxu1 %v1982_v36  ;;  %v2045_v36 = vld [vmem:[#allocation7 + $0x294] ss:$8 sps:$4 sm:$0xff]  }
 0x168   :  { %1463 = vmatpush1.bf16.msra.mxu1 %v1980_v37  ;;  %v2043_v37 = vld [vmem:[#allocation7 + $0x290] ss:$8 sps:$4 sm:$0xff]  }
 0x169   :  { %1464 = vmatprep.subr.bf16.mxu1 %v1985_v39  ;;  %v2048_v39 = vld [vmem:[#allocation7 + $0x2a4] ss:$8 sps:$4 sm:$0xff]  }
 0x16c   :  { %1465 = vmatpush1.bf16.msra.mxu1 %v1983_v40  ;;  %v2046_v40 = vld [vmem:[#allocation7 + $0x2a0] ss:$8 sps:$4 sm:$0xff]  }
 0x16d   :  { %1466 = vmatprep.subr.bf16.mxu1 %v1988_v41  ;;  %v2051_v41 = vld [vmem:[#allocation7 + $0x2b4] ss:$8 sps:$4 sm:$0xff]  }
 0x170   :  { %1467 = vmatpush1.bf16.msra.mxu1 %v1986_v42  ;;  %v2049_v42 = vld [vmem:[#allocation7 + $0x2b0] ss:$8 sps:$4 sm:$0xff]  }
 0x171   :  { %1468 = vmatprep.subr.bf16.mxu1 %v1991_v43  ;;  %v2054_v43 = vld [vmem:[#allocation7 + $0x2c4] ss:$8 sps:$4 sm:$0xff]  }
 0x174   :  { %1469 = vmatpush1.bf16.msra.mxu1 %v1989_v44  ;;  %v2052_v44 = vld [vmem:[#allocation7 + $0x2c0] ss:$8 sps:$4 sm:$0xff]  }
 0x175   :  { %1470 = vmatprep.subr.bf16.mxu1 %v1994_v45  ;;  %v2057_v45 = vld [vmem:[#allocation7 + $0x2d4] ss:$8 sps:$4 sm:$0xff]  }
 0x178   :  { %1471 = vmatpush1.bf16.msra.mxu1 %v1992_v46  ;;  %v184_v46 = vsub.s32 4, %v2247_v9 }
 0x179   :  { %1472 = vmatprep.subr.bf16.mxu1 %v1997_v47  ;;  %v188_v47 = vsub.s32 5, %v2247_v9 }
 0x17c   :  { %1473 = vmatpush1.bf16.msra.mxu1 %v1995_v48  ;;  %v2055_v48 = vld [vmem:[#allocation7 + $0x2d0] ss:$8 sps:$4 sm:$0xff]  }
 0x17d   :  { %1474 = vmatprep.subr.bf16.mxu1 %v2000_v15  ;;  %v185_v15 = vrot.slane %v2253_v11, %v184_v46 }
 0x180   :  { %1475 = vmatpush1.bf16.msra.mxu1 %v1998_v49  ;;  %v2060_v49 = vld [vmem:[#allocation7 + $0x2e4] ss:$8 sps:$4 sm:$0xff]  }
 0x181   :  { %1476 = vmatprep.subr.bf16.mxu1 %v2003_v50  ;;  %v189_v50 = vrot.slane %v2253_v11, %v188_v47 }
 0x184   :  { %1477 = vmatpush1.bf16.msra.mxu1 %v2001_v51 }
 0x185   :  { %1478 = vmatprep.subr.bf16.mxu1 %v2006_v52  ;;  %v2058_v52 = vld [vmem:[#allocation7 + $0x2e0] ss:$8 sps:$4 sm:$0xff]  }
 0x188   :  { %1479 = vmatpush1.bf16.msra.mxu1 %v2004_v53 }
 0x189   :  { %1480 = vmatprep.subr.bf16.mxu1 %v2009_v54 }
 0x18c   :  { %v753_v61 = vpop.f32.mrb[4].mxu0  ;;  %1481 = vmatpush1.bf16.msra.mxu1 %v2007_v57 }
 0x18d   :  { %v754_v63 = vadd.f32 %v753_v61, %v177_v58  ;;  %v755_v0 = vpop.f32.mrb[5].mxu0  ;;  %1482 = vmatprep.subr.bf16.mxu1 %v2012_v59  ;;  %v2061_v61 = vld [vmem:[#allocation7 + $0x2f0] ss:$8 sps:$4 sm:$0xff]  }
 0x18e   :  { %v756_v2 = vadd.f32 %v755_v0, %v181_v60  ;;  %v757_v3 = vpop.f32.mrb[6].mxu0 }
 0x18f   :  { %v807_v4 = vmax.f32 %v754_v63, 0.0  ;;  %v758_v5 = vadd.f32 %v757_v3, %v177_v58  ;;  %v759_v6 = vpop.f32.mrb[7].mxu0  ;;  %v919_v3 = vld [vmem:[%s2296_s4] sm:$0x3]  ;;  %s2130_s4 = scalar_lea.vmem %s1550_s11, 512 }
 0x190   :  { %v760_v7 = vadd.f32 %v759_v6, %v181_v60  ;;  %1483 = vmatpush1.bf16.msra.mxu1 %v2010_v62  ;;  %v808_v14 = vmax.f32 %v756_v2, 0.0  ;;  %p2131_p10 = scmp.ne.s32.totalorder %s1550_s11, %s2130_s4  ;;  %p2136_p12 = scmp.lt.s32.totalorder %s2130_s4, %s2130_s4 }
 0x191   :  { %v813_v13 = vmax.f32 %v758_v5, 0.0  ;;  %1484 = vmatprep.subr.bf16.mxu1 %v2015_v1  ;;  %v928_v5 = vrot.slane %v919_v3, %v172_v12 }
 0x192   :  { %v814_v16 = vmax.f32 %v760_v7, 0.0  ;;  %p2137_p13 = por %p2136_p12, %p2135_p11 }
 0x193   :  { %v915_v17 = vpack.c.bf16 %v813_v13, %v807_v4  ;;  %v924_v4 = vrot.slane %v919_v3, %v168_v10 }
 0x194   :  { %v916_v18 = vpack.c.bf16 %v814_v16, %v808_v14  ;;  %1485 = vmatpush1.bf16.msra.mxu1 %v2013_v8  ;;  %p2138_p0 = pnand %p2137_p13, %p2131_p10 }
 0x195   :  { %1497 = vmatprep.subr.bf16.mxu1 %v2018_v38 }
 0x196   :  { %1486 = vmatprep.mubr.bf16.mxu1 %v916_v18 }
 0x197   :  { %1487 = vmatmul.mubr.bf16.vlgmr.msra.gmra.mrb[0].mxu1 %v915_v17 }
 0x198   :  { %1498 = vmatpush1.bf16.msra.mxu1 %v2016_v19 }
 0x199   :  { %1499 = vmatprep.subr.bf16.mxu1 %v2021_v20 }
 0x19c   :  { %1500 = vmatpush1.bf16.msra.mxu1 %v2019_v21 }
 0x19d   :  { %1501 = vmatprep.subr.bf16.mxu1 %v2024_v22 }
 0x1a0   :  { %1502 = vmatpush1.bf16.msra.mxu1 %v2022_v23 }
 0x1a1   :  { %1503 = vmatprep.subr.bf16.mxu1 %v2027_v24 }
 0x1a4   :  { %1504 = vmatpush1.bf16.msra.mxu1 %v2025_v25 }
 0x1a5   :  { %1505 = vmatprep.subr.bf16.mxu1 %v2030_v26 }
 0x1a8   :  { %1506 = vmatpush1.bf16.msra.mxu1 %v2028_v27 }
 0x1a9   :  { %1507 = vmatprep.subr.bf16.mxu1 %v2033_v28 }
 0x1ac   :  { %1508 = vmatpush1.bf16.msra.mxu1 %v2031_v29 }
 0x1ad   :  { %1509 = vmatprep.subr.bf16.mxu1 %v2036_v30 }
 0x1b0   :  { %1510 = vmatpush1.bf16.msra.mxu1 %v2034_v31 }
 0x1b1   :  { %1511 = vmatprep.subr.bf16.mxu1 %v2039_v32 }
 0x1b4   :  { %1512 = vmatpush1.bf16.msra.mxu1 %v2037_v33 }
 0x1b5   :  { %1513 = vmatprep.subr.bf16.mxu1 %v2042_v34 }
 0x1b8   :  { %1514 = vmatpush1.bf16.msra.mxu1 %v2040_v35 }
 0x1b9   :  { %1515 = vmatprep.subr.bf16.mxu1 %v2045_v36 }
 0x1bc   :  { %1516 = vmatpush1.bf16.msra.mxu1 %v2043_v37 }
 0x1bd   :  { %1517 = vmatprep.subr.bf16.mxu1 %v2048_v39 }
 0x1c0   :  { %1518 = vmatpush1.bf16.msra.mxu1 %v2046_v40 }
 0x1c1   :  { %1519 = vmatprep.subr.bf16.mxu1 %v2051_v41 }
 0x1c4   :  { %1520 = vmatpush1.bf16.msra.mxu1 %v2049_v42 }
 0x1c5   :  { %1521 = vmatprep.subr.bf16.mxu1 %v2054_v43 }
 0x1c8   :  { %1522 = vmatpush1.bf16.msra.mxu1 %v2052_v44 }
 0x1c9   :  { %1523 = vmatprep.subr.bf16.mxu1 %v2057_v45 }
 0x1cc   :  { %v796_v51 = vpop.f32.mrb[8].mxu0  ;;  %1524 = vmatpush1.bf16.msra.mxu1 %v2055_v48 }
 0x1cd   :  { %v797_v53 = vadd.f32 %v796_v51, %v185_v15  ;;  %v798_v54 = vpop.f32.mrb[9].mxu0  ;;  %1525 = vmatprep.subr.bf16.mxu1 %v2060_v49 }
 0x1ce   :  { %v799_v56 = vadd.f32 %v798_v54, %v189_v50  ;;  %v800_v57 = vpop.f32.mrb[10].mxu0 }
 0x1cf   :  { %v801_v58 = vadd.f32 %v800_v57, %v185_v15  ;;  %v802_v59 = vpop.f32.mrb[11].mxu0  ;;  %v809_v62 = vmax.f32 %v797_v53, 0.0 }
 0x1d0   :  { %v803_v60 = vadd.f32 %v802_v59, %v189_v50  ;;  %1526 = vmatpush1.bf16.msra.mxu1 %v2058_v52  ;;  %v810_v0 = vmax.f32 %v799_v56, 0.0 }
 0x1d1   :  { %v815_v63 = vmax.f32 %v801_v58, 0.0  ;;  %1527 = vmatprep.subr.bf16.mxu1 %v2063_v55 }
 0x1d2   :  { %v816_v1 = vmax.f32 %v803_v60, 0.0 }
 0x1d3   :  { %v917_v11 = vpack.c.bf16 %v815_v63, %v809_v62 }
 0x1d4   :  { %v918_v2 = vpack.c.bf16 %v816_v1, %v810_v0  ;;  %1528 = vmatpush1.bf16.msra.mxu1 %v2061_v61 }
 0x1d6   :  { %1529 = vmatprep.mubr.bf16.mxu1 %v918_v2 }
 0x1d7   :  { %1530 = vmatmul.mubr.bf16.vlgmr.msra.gmra.mrb[0].mxu1 %v917_v11 }
 0x2aa   :  { %v1531_v6 = vpop.f32.mrb[0].mxu1 }
 0x2ab   :  { %v1754_v7 = vadd.f32 %v1531_v6, %v924_v4  ;;  %v1533_v8 = vpop.f32.mrb[1].mxu1 }
 0x2ac   :  { %v1755_v13 = vadd.f32 %v1533_v8, %v928_v5  ;;  %v1535_v38 = vpop.f32.mrb[2].mxu1 }
 0x2ad   :  { %1540 = vst [vmem:[#allocation8] sm:$0xff] %v1754_v7  ;;  %v1756_v14 = vadd.f32 %v1535_v38, %v924_v4  ;;  %v1537_v16 = vpop.f32.mrb[3].mxu1 }
 0x2ae   :  { %1541 = vst [vmem:[#allocation8 + $0x8] sm:$0xff] %v1755_v13  ;;  %v1757_v17 = vadd.f32 %v1537_v16, %v928_v5 }
 0x2af   :  { %1542 = vst [vmem:[#allocation8 + $0x10] sm:$0xff] %v1756_v14 }
 0x2b0   :  { %1543 = vst [vmem:[#allocation8 + $0x18] sm:$0xff] %v1757_v17 }
 0x2b1   :  { %2141 = shalt.err (!%p2138_p0)
}
 0x2b2   :  { %s2142_s14 = scalar_lea.hbm %s2297_s5, 512 }
 0x2b3   :  { %p2143_p1 = scmp.ne.s32.totalorder %s2297_s5, %s2142_s14  ;;  %p2146_p2 = scmp.lt.u32.totalorder %s2142_s14, %s2297_s5 }
 0x2b5   :  { %p2148_p3 = pnand %p2146_p2, %p2143_p1 }
 0x2b7   :  { %2151 = shalt.err (!%p2148_p3)
}
 0x2b8   :  { %1555 = dma.vmem_to_hbm [thread:$0]  %s1550_s11, 512, %s2297_s5, [#allocation4], %s2162_s1, %s2162_s1, %s2163_s17  }
 0x2b9   :  { %2156 = dma.done.wait [#allocation4], 512  }
 0x2ba   :  { %2157 = vsyncadd [#allocation4], 4294966784 }
 0x2bb   :  { %1559 = vsyncpa [#allocation3], 1 }
 0x2bc   :  { %1560 = vsyncpa [#allocation6], 1 }
 0x2bd   :  { %1561 = vsyncpa [#allocation4], 1 }

</bundles_post_ra>
